<compile_context>
chip_gen: v7x
topology: tpu7x:2x2x1
jax: 0.10.0
libtpu: 0.0.40
codegen_flags: <defaults>
</compile_context>

<pallas_src>
import functools

import jax
import jax.numpy as jnp
from jax.experimental import pallas as pl
from jax.experimental.pallas import tpu as pltpu


def _round_up(n, m=8):
    return ((n + m - 1) // m) * m


# ----------------------------------------------------------------------------
# Fused kernel: whole (small) batch resident in VMEM, single grid point.
#   x_ref  : (N, Cin_p, H*W)       channel-major, spatial flattened on lanes
#   wK_ref : (CoutK_p, 9*CinK_p)   conv weights as a single im2col matrix
#   bK/gK/betaK_ref : (CoutK_p, 1) per-channel conv bias / BN gamma / BN beta
#   o_ref  : (N, Cout2_p, H*W)
# ----------------------------------------------------------------------------
def fused_double_conv_kernel(x_ref, w1_ref, b1_ref, g1_ref, be1_ref,
                             w2_ref, b2_ref, g2_ref, be2_ref, o_ref,
                             *, H, W, eps):
    N = x_ref.shape[0]
    HW = H * W

    # ---- per-tap lane shift + border mask, computed once, shared by both convs.
    pos = jax.lax.broadcasted_iota(jnp.int32, (1, HW), 1)
    if (W & (W - 1)) == 0:
        col = jnp.bitwise_and(pos, W - 1)          # pos % W for power-of-two W
    else:
        col = pos % W                              # TODO(synk): vector int mod path
    taps = []
    for kh in range(3):
        for kw in range(3):
            s = (kh - 1) * W + (kw - 1)            # flat offset of the source pixel
            conds = []
            if kh == 0:
                conds.append(pos >= W)             # needs row i-1 >= 0
            if kh == 2:
                conds.append(pos < (H - 1) * W)    # needs row i+1 <= H-1
            if kw == 0:
                conds.append(col >= 1)             # needs col j-1 >= 0
            if kw == 2:
                conds.append(col <= W - 2)         # needs col j+1 <= W-1
            if conds:
                m = conds[0]
                for c in conds[1:]:
                    m = m & c
                mask = m.astype(jnp.float32)       # (1, HW)
            else:
                mask = None                        # center tap: no masking needed
            taps.append((s, mask))

    def im2col(xc):
        # xc: (C, HW) -> (9*C, HW); rows [t*C:(t+1)*C] = tap-t shifted, masked copy.
        parts = []
        for s, mask in taps:
            part = xc if s == 0 else pltpu.roll(xc, shift=(-s) % HW, axis=1)
            if mask is not None:
                part = part * mask
            parts.append(part)
        return jnp.concatenate(parts, axis=0)

    def conv3x3(xc, wmat, bias):
        # Single MXU push with K = 9*Cin; bias added once in the epilogue.
        return jnp.dot(wmat, im2col(xc), preferred_element_type=jnp.float32) + bias

    def bn_relu(ys, gamma, beta):
        # BatchNorm2d training-mode: per-channel stats over (N, H, W), biased
        # variance, eps inside rsqrt, affine, then ReLU.
        inv_count = 1.0 / float(N * HW)
        total = ys[0].sum(axis=1, keepdims=True)
        for y in ys[1:]:
            total = total + y.sum(axis=1, keepdims=True)
        mean = total * inv_count                                  # (C, 1)
        sq = jnp.square(ys[0] - mean).sum(axis=1, keepdims=True)
        for y in ys[1:]:
            sq = sq + jnp.square(y - mean).sum(axis=1, keepdims=True)
        var = sq * inv_count                                      # (C, 1)
        scale = gamma * jax.lax.rsqrt(var + eps)                  # (C, 1)
        shift = beta - mean * scale                               # (C, 1)
        return [jnp.maximum(y * scale + shift, 0.0) for y in ys]

    w1 = w1_ref[...]
    b1 = b1_ref[...]
    w2 = w2_ref[...]
    b2 = b2_ref[...]

    # conv_block 1
    y = [conv3x3(x_ref[n], w1, b1) for n in range(N)]
    y = bn_relu(y, g1_ref[...], be1_ref[...])
    # conv_block 2
    y = [conv3x3(y[n], w2, b2) for n in range(N)]
    y = bn_relu(y, g2_ref[...], be2_ref[...])

    for n in range(N):
        o_ref[n] = y[n]                            # (Cout2_p, HW): lane-dense store


# ----------------------------------------------------------------------------
# Wrapper-side layout plumbing (reshape / channel padding / weight folding).
# ----------------------------------------------------------------------------
def _prep_conv_params(w, b, gamma, beta, cin_padded):
    """Pad channels to sublane multiples and fold OIHW weights into the
    (Cout_p, 9*Cin_p) im2col matrix; row index = (kh*3 + kw) * Cin_p + cin."""
    cout, cin, kh, kw = w.shape
    assert (kh, kw) == (3, 3)
    cout_p = _round_up(cout)
    w = jnp.pad(w.astype(jnp.float32),
                ((0, cout_p - cout), (0, cin_padded - cin), (0, 0), (0, 0)))
    wmat = jnp.transpose(w, (0, 2, 3, 1)).reshape(cout_p, 9 * cin_padded)

    def col(v, fill):
        return jnp.pad(v.astype(jnp.float32), (0, cout_p - cout),
                       constant_values=fill).reshape(cout_p, 1)

    return wmat, col(b, 0.0), col(gamma, 1.0), col(beta, 0.0), cout_p


@jax.jit
def double_conv_block_forward(x_nchw, params):
    eps = 1e-5
    N, Cin, H, W = x_nchw.shape
    HW = H * W
    cin_p = _round_up(Cin)

    w1m, b1c, g1c, be1c, c1p = _prep_conv_params(
        params["w1"], params["b1"], params["gamma1"], params["beta1"], cin_p)
    w2m, b2c, g2c, be2c, c2p = _prep_conv_params(
        params["w2"], params["b2"], params["gamma2"], params["beta2"], c1p)
    cout2 = params["w2"].shape[0]

    # NCHW -> (N, Cin_p, H*W): contiguous reshape + tiny channel pad only.
    xf = jnp.pad(x_nchw.astype(jnp.float32).reshape(N, Cin, HW),
                 ((0, 0), (0, cin_p - Cin), (0, 0)))

    kernel = functools.partial(fused_double_conv_kernel, H=H, W=W, eps=eps)
    out = pl.pallas_call(
        kernel,
        out_shape=jax.ShapeDtypeStruct((N, c2p, HW), jnp.float32),
        in_specs=[
            pl.BlockSpec((N, cin_p, HW), lambda: (0, 0, 0)),
            pl.BlockSpec((c1p, 9 * cin_p), lambda: (0, 0)),
            pl.BlockSpec((c1p, 1), lambda: (0, 0)),
            pl.BlockSpec((c1p, 1), lambda: (0, 0)),
            pl.BlockSpec((c1p, 1), lambda: (0, 0)),
            pl.BlockSpec((c2p, 9 * c1p), lambda: (0, 0)),
            pl.BlockSpec((c2p, 1), lambda: (0, 0)),
            pl.BlockSpec((c2p, 1), lambda: (0, 0)),
            pl.BlockSpec((c2p, 1), lambda: (0, 0)),
        ],
        out_specs=pl.BlockSpec((N, c2p, HW), lambda: (0, 0, 0)),
    )(xf, w1m, b1c, g1c, be1c, w2m, b2c, g2c, be2c)

    # (N, Cout2_p, H*W) -> NCHW, dropping channel padding.
    return out.reshape(N, c2p, H, W)[:, :cout2]


# ----------------------------------------------------------------------------
# Pure-JAX reference (conv + train-mode BN + ReLU, twice) and parameter init.
# ----------------------------------------------------------------------------
def reference_double_conv(x, params, eps=1e-5):
    def block(x, w, b, g, be):
        y = jax.lax.conv_general_dilated(
            x, w, window_strides=(1, 1), padding=((1, 1), (1, 1)),
            dimension_numbers=("NCHW", "OIHW", "NCHW"))
        y = y + b.reshape(1, -1, 1, 1)
        mean = jnp.mean(y, axis=(0, 2, 3), keepdims=True)
        var = jnp.mean(jnp.square(y - mean), axis=(0, 2, 3), keepdims=True)
        y = (y - mean) * jax.lax.rsqrt(var + eps)
        y = y * g.reshape(1, -1, 1, 1) + be.reshape(1, -1, 1, 1)
        return jnp.maximum(y, 0.0)

    y = block(x, params["w1"], params["b1"], params["gamma1"], params["beta1"])
    return block(y, params["w2"], params["b2"], params["gamma2"], params["beta2"])


def init_params(key, in_features, out_features1, out_features2):
    k = jax.random.split(key, 6)
    s1 = 1.0 / jnp.sqrt(in_features * 9.0)
    s2 = 1.0 / jnp.sqrt(out_features1 * 9.0)
    return {
        "w1": jax.random.normal(k[0], (out_features1, in_features, 3, 3),
                                jnp.float32) * s1,
        "b1": jax.random.normal(k[1], (out_features1,), jnp.float32) * s1,
        "gamma1": 1.0 + 0.1 * jax.random.normal(k[2], (out_features1,), jnp.float32),
        "beta1": 0.1 * jax.random.normal(k[3], (out_features1,), jnp.float32),
        "w2": jax.random.normal(k[4], (out_features2, out_features1, 3, 3),
                                jnp.float32) * s2,
        "b2": jax.random.normal(k[5], (out_features2,), jnp.float32) * s2,
        "gamma2": jnp.ones((out_features2,), jnp.float32),
        "beta2": jnp.zeros((out_features2,), jnp.float32),
    }


if __name__ == "__main__":
    key = jax.random.PRNGKey(0)
    kx, kp = jax.random.split(key)

    N, Cin, H, W = 2, 4, 16, 16
    Cout1, Cout2 = 8, 8

    x = jax.random.normal(kx, (N, Cin, H, W), jnp.float32)
    params = init_params(kp, Cin, Cout1, Cout2)

    out = double_conv_block_forward(x, params)
    jax.block_until_ready(out)
    assert out.shape == (N, Cout2, H, W), out.shape

    ref = reference_double_conv(x, params)
    max_err = float(jnp.max(jnp.abs(out - ref)))
    assert max_err < 1e-4, f"max abs error vs reference: {max_err}"

    print("KERNEL_OK")
</pallas_src>

<mosaic_0001>
module attributes {stable_mosaic.version = 11 : i64} {
  func.func @fused_double_conv_kernel(%arg0: memref<2x8x256xf32, #tpu.memory_space<vmem>>, %arg1: memref<8x72xf32, #tpu.memory_space<vmem>>, %arg2: memref<8x1xf32, #tpu.memory_space<vmem>>, %arg3: memref<8x1xf32, #tpu.memory_space<vmem>>, %arg4: memref<8x1xf32, #tpu.memory_space<vmem>>, %arg5: memref<8x72xf32, #tpu.memory_space<vmem>>, %arg6: memref<8x1xf32, #tpu.memory_space<vmem>>, %arg7: memref<8x1xf32, #tpu.memory_space<vmem>>, %arg8: memref<8x1xf32, #tpu.memory_space<vmem>>, %arg9: memref<2x8x256xf32, #tpu.memory_space<vmem>>) attributes {dimension_semantics = [], scalar_prefetch = 0 : i64, scratch_operands = 0 : i64, tpu.core_type = #tpu.core_type<tc>} {
    %0 = tpu.iota {dimensions = array<i32: 1>} : vector<1x256xi32>
    %c15_i32 = arith.constant 15 : i32
    %1 = vector.broadcast %c15_i32 : i32 to vector<1x256xi32>
    %2 = arith.andi %0, %1 : vector<1x256xi32>
    %c16_i32 = arith.constant 16 : i32
    %3 = vector.broadcast %c16_i32 : i32 to vector<1x256xi32>
    %4 = arith.cmpi sge, %0, %3 : vector<1x256xi32>
    %c1_i32 = arith.constant 1 : i32
    %5 = vector.broadcast %c1_i32 : i32 to vector<1x256xi32>
    %6 = arith.cmpi sge, %2, %5 : vector<1x256xi32>
    %7 = arith.andi %4, %6 : vector<1x256xi1>
    %8 = arith.extui %7 : vector<1x256xi1> to vector<1x256xi32>
    %9 = arith.sitofp %8 : vector<1x256xi32> to vector<1x256xf32>
    %c16_i32_0 = arith.constant 16 : i32
    %10 = vector.broadcast %c16_i32_0 : i32 to vector<1x256xi32>
    %11 = arith.cmpi sge, %0, %10 : vector<1x256xi32>
    %12 = arith.extui %11 : vector<1x256xi1> to vector<1x256xi32>
    %13 = arith.sitofp %12 : vector<1x256xi32> to vector<1x256xf32>
    %c16_i32_1 = arith.constant 16 : i32
    %14 = vector.broadcast %c16_i32_1 : i32 to vector<1x256xi32>
    %15 = arith.cmpi sge, %0, %14 : vector<1x256xi32>
    %c14_i32 = arith.constant 14 : i32
    %16 = vector.broadcast %c14_i32 : i32 to vector<1x256xi32>
    %17 = arith.cmpi sle, %2, %16 : vector<1x256xi32>
    %18 = arith.andi %15, %17 : vector<1x256xi1>
    %19 = arith.extui %18 : vector<1x256xi1> to vector<1x256xi32>
    %20 = arith.sitofp %19 : vector<1x256xi32> to vector<1x256xf32>
    %c1_i32_2 = arith.constant 1 : i32
    %21 = vector.broadcast %c1_i32_2 : i32 to vector<1x256xi32>
    %22 = arith.cmpi sge, %2, %21 : vector<1x256xi32>
    %23 = arith.extui %22 : vector<1x256xi1> to vector<1x256xi32>
    %24 = arith.sitofp %23 : vector<1x256xi32> to vector<1x256xf32>
    %c14_i32_3 = arith.constant 14 : i32
    %25 = vector.broadcast %c14_i32_3 : i32 to vector<1x256xi32>
    %26 = arith.cmpi sle, %2, %25 : vector<1x256xi32>
    %27 = arith.extui %26 : vector<1x256xi1> to vector<1x256xi32>
    %28 = arith.sitofp %27 : vector<1x256xi32> to vector<1x256xf32>
    %c240_i32 = arith.constant 240 : i32
    %29 = vector.broadcast %c240_i32 : i32 to vector<1x256xi32>
    %30 = arith.cmpi slt, %0, %29 : vector<1x256xi32>
    %c1_i32_4 = arith.constant 1 : i32
    %31 = vector.broadcast %c1_i32_4 : i32 to vector<1x256xi32>
    %32 = arith.cmpi sge, %2, %31 : vector<1x256xi32>
    %33 = arith.andi %30, %32 : vector<1x256xi1>
    %34 = arith.extui %33 : vector<1x256xi1> to vector<1x256xi32>
    %35 = arith.sitofp %34 : vector<1x256xi32> to vector<1x256xf32>
    %c240_i32_5 = arith.constant 240 : i32
    %36 = vector.broadcast %c240_i32_5 : i32 to vector<1x256xi32>
    %37 = arith.cmpi slt, %0, %36 : vector<1x256xi32>
    %38 = arith.extui %37 : vector<1x256xi1> to vector<1x256xi32>
    %39 = arith.sitofp %38 : vector<1x256xi32> to vector<1x256xf32>
    %c240_i32_6 = arith.constant 240 : i32
    %40 = vector.broadcast %c240_i32_6 : i32 to vector<1x256xi32>
    %41 = arith.cmpi slt, %0, %40 : vector<1x256xi32>
    %c14_i32_7 = arith.constant 14 : i32
    %42 = vector.broadcast %c14_i32_7 : i32 to vector<1x256xi32>
    %43 = arith.cmpi sle, %2, %42 : vector<1x256xi32>
    %44 = arith.andi %41, %43 : vector<1x256xi1>
    %45 = arith.extui %44 : vector<1x256xi1> to vector<1x256xi32>
    %46 = arith.sitofp %45 : vector<1x256xi32> to vector<1x256xf32>
    %c0 = arith.constant 0 : index
    %c0_8 = arith.constant 0 : index
    %47 = vector.load %arg1[%c0, %c0_8] : memref<8x72xf32, #tpu.memory_space<vmem>>, vector<8x72xf32>
    %c0_9 = arith.constant 0 : index
    %c0_10 = arith.constant 0 : index
    %48 = vector.load %arg2[%c0_9, %c0_10] : memref<8x1xf32, #tpu.memory_space<vmem>>, vector<8x1xf32>
    %c0_11 = arith.constant 0 : index
    %c0_12 = arith.constant 0 : index
    %49 = vector.load %arg5[%c0_11, %c0_12] : memref<8x72xf32, #tpu.memory_space<vmem>>, vector<8x72xf32>
    %c0_13 = arith.constant 0 : index
    %c0_14 = arith.constant 0 : index
    %50 = vector.load %arg6[%c0_13, %c0_14] : memref<8x1xf32, #tpu.memory_space<vmem>>, vector<8x1xf32>
    %c0_15 = arith.constant 0 : index
    %c0_16 = arith.constant 0 : index
    %c0_17 = arith.constant 0 : index
    %51 = vector.load %arg0[%c0_15, %c0_16, %c0_17] : memref<2x8x256xf32, #tpu.memory_space<vmem>>, vector<1x8x256xf32>
    %52 = vector.shape_cast %51 : vector<1x8x256xf32> to vector<8x256xf32>
    %c17_i32 = arith.constant 17 : i32
    %53 = tpu.dynamic_rotate %52 by %c17_i32 dim 1 : vector<8x256xf32>, i32 -> vector<8x256xf32>
    %54 = vector.broadcast %9 : vector<1x256xf32> to vector<8x256xf32>
    %55 = arith.mulf %53, %54 : vector<8x256xf32>
    %c16_i32_18 = arith.constant 16 : i32
    %56 = tpu.dynamic_rotate %52 by %c16_i32_18 dim 1 : vector<8x256xf32>, i32 -> vector<8x256xf32>
    %57 = vector.broadcast %13 : vector<1x256xf32> to vector<8x256xf32>
    %58 = arith.mulf %56, %57 : vector<8x256xf32>
    %c15_i32_19 = arith.constant 15 : i32
    %59 = tpu.dynamic_rotate %52 by %c15_i32_19 dim 1 : vector<8x256xf32>, i32 -> vector<8x256xf32>
    %60 = vector.broadcast %20 : vector<1x256xf32> to vector<8x256xf32>
    %61 = arith.mulf %59, %60 : vector<8x256xf32>
    %c1_i32_20 = arith.constant 1 : i32
    %62 = tpu.dynamic_rotate %52 by %c1_i32_20 dim 1 : vector<8x256xf32>, i32 -> vector<8x256xf32>
    %63 = vector.broadcast %24 : vector<1x256xf32> to vector<8x256xf32>
    %64 = arith.mulf %62, %63 : vector<8x256xf32>
    %c255_i32 = arith.constant 255 : i32
    %65 = tpu.dynamic_rotate %52 by %c255_i32 dim 1 : vector<8x256xf32>, i32 -> vector<8x256xf32>
    %66 = vector.broadcast %28 : vector<1x256xf32> to vector<8x256xf32>
    %67 = arith.mulf %65, %66 : vector<8x256xf32>
    %c241_i32 = arith.constant 241 : i32
    %68 = tpu.dynamic_rotate %52 by %c241_i32 dim 1 : vector<8x256xf32>, i32 -> vector<8x256xf32>
    %69 = vector.broadcast %35 : vector<1x256xf32> to vector<8x256xf32>
    %70 = arith.mulf %68, %69 : vector<8x256xf32>
    %c240_i32_21 = arith.constant 240 : i32
    %71 = tpu.dynamic_rotate %52 by %c240_i32_21 dim 1 : vector<8x256xf32>, i32 -> vector<8x256xf32>
    %72 = vector.broadcast %39 : vector<1x256xf32> to vector<8x256xf32>
    %73 = arith.mulf %71, %72 : vector<8x256xf32>
    %c239_i32 = arith.constant 239 : i32
    %74 = tpu.dynamic_rotate %52 by %c239_i32 dim 1 : vector<8x256xf32>, i32 -> vector<8x256xf32>
    %75 = vector.broadcast %46 : vector<1x256xf32> to vector<8x256xf32>
    %76 = arith.mulf %74, %75 : vector<8x256xf32>
    %77 = tpu.concatenate %55, %58, %61, %64, %52, %67, %70, %73, %76 in 0 : vector<8x256xf32>, vector<8x256xf32>, vector<8x256xf32>, vector<8x256xf32>, vector<8x256xf32>, vector<8x256xf32>, vector<8x256xf32>, vector<8x256xf32>, vector<8x256xf32> -> vector<72x256xf32>
    %cst = arith.constant dense<0.000000e+00> : vector<8x256xf32>
    %78 = tpu.matmul %47, %77, %cst {dimension_numbers = #tpu.dot_dimension_numbers<[1], [0], [0], [1], [0, 0, 1, 1], [], []>} : vector<8x72xf32>, vector<72x256xf32>, vector<8x256xf32> -> vector<8x256xf32>
    %79 = vector.broadcast %48 : vector<8x1xf32> to vector<8x256xf32>
    %80 = arith.addf %78, %79 : vector<8x256xf32>
    %c1 = arith.constant 1 : index
    %c0_22 = arith.constant 0 : index
    %c0_23 = arith.constant 0 : index
    %81 = vector.load %arg0[%c1, %c0_22, %c0_23] : memref<2x8x256xf32, #tpu.memory_space<vmem>>, vector<1x8x256xf32>
    %82 = vector.shape_cast %81 : vector<1x8x256xf32> to vector<8x256xf32>
    %c17_i32_24 = arith.constant 17 : i32
    %83 = tpu.dynamic_rotate %82 by %c17_i32_24 dim 1 : vector<8x256xf32>, i32 -> vector<8x256xf32>
    %84 = vector.broadcast %9 : vector<1x256xf32> to vector<8x256xf32>
    %85 = arith.mulf %83, %84 : vector<8x256xf32>
    %c16_i32_25 = arith.constant 16 : i32
    %86 = tpu.dynamic_rotate %82 by %c16_i32_25 dim 1 : vector<8x256xf32>, i32 -> vector<8x256xf32>
    %87 = vector.broadcast %13 : vector<1x256xf32> to vector<8x256xf32>
    %88 = arith.mulf %86, %87 : vector<8x256xf32>
    %c15_i32_26 = arith.constant 15 : i32
    %89 = tpu.dynamic_rotate %82 by %c15_i32_26 dim 1 : vector<8x256xf32>, i32 -> vector<8x256xf32>
    %90 = vector.broadcast %20 : vector<1x256xf32> to vector<8x256xf32>
    %91 = arith.mulf %89, %90 : vector<8x256xf32>
    %c1_i32_27 = arith.constant 1 : i32
    %92 = tpu.dynamic_rotate %82 by %c1_i32_27 dim 1 : vector<8x256xf32>, i32 -> vector<8x256xf32>
    %93 = vector.broadcast %24 : vector<1x256xf32> to vector<8x256xf32>
    %94 = arith.mulf %92, %93 : vector<8x256xf32>
    %c255_i32_28 = arith.constant 255 : i32
    %95 = tpu.dynamic_rotate %82 by %c255_i32_28 dim 1 : vector<8x256xf32>, i32 -> vector<8x256xf32>
    %96 = vector.broadcast %28 : vector<1x256xf32> to vector<8x256xf32>
    %97 = arith.mulf %95, %96 : vector<8x256xf32>
    %c241_i32_29 = arith.constant 241 : i32
    %98 = tpu.dynamic_rotate %82 by %c241_i32_29 dim 1 : vector<8x256xf32>, i32 -> vector<8x256xf32>
    %99 = vector.broadcast %35 : vector<1x256xf32> to vector<8x256xf32>
    %100 = arith.mulf %98, %99 : vector<8x256xf32>
    %c240_i32_30 = arith.constant 240 : i32
    %101 = tpu.dynamic_rotate %82 by %c240_i32_30 dim 1 : vector<8x256xf32>, i32 -> vector<8x256xf32>
    %102 = vector.broadcast %39 : vector<1x256xf32> to vector<8x256xf32>
    %103 = arith.mulf %101, %102 : vector<8x256xf32>
    %c239_i32_31 = arith.constant 239 : i32
    %104 = tpu.dynamic_rotate %82 by %c239_i32_31 dim 1 : vector<8x256xf32>, i32 -> vector<8x256xf32>
    %105 = vector.broadcast %46 : vector<1x256xf32> to vector<8x256xf32>
    %106 = arith.mulf %104, %105 : vector<8x256xf32>
    %107 = tpu.concatenate %85, %88, %91, %94, %82, %97, %100, %103, %106 in 0 : vector<8x256xf32>, vector<8x256xf32>, vector<8x256xf32>, vector<8x256xf32>, vector<8x256xf32>, vector<8x256xf32>, vector<8x256xf32>, vector<8x256xf32>, vector<8x256xf32> -> vector<72x256xf32>
    %cst_32 = arith.constant dense<0.000000e+00> : vector<8x256xf32>
    %108 = tpu.matmul %47, %107, %cst_32 {dimension_numbers = #tpu.dot_dimension_numbers<[1], [0], [0], [1], [0, 0, 1, 1], [], []>} : vector<8x72xf32>, vector<72x256xf32>, vector<8x256xf32> -> vector<8x256xf32>
    %109 = vector.broadcast %48 : vector<8x1xf32> to vector<8x256xf32>
    %110 = arith.addf %108, %109 : vector<8x256xf32>
    %c0_33 = arith.constant 0 : index
    %c0_34 = arith.constant 0 : index
    %111 = vector.load %arg3[%c0_33, %c0_34] : memref<8x1xf32, #tpu.memory_space<vmem>>, vector<8x1xf32>
    %c0_35 = arith.constant 0 : index
    %c0_36 = arith.constant 0 : index
    %112 = vector.load %arg4[%c0_35, %c0_36] : memref<8x1xf32, #tpu.memory_space<vmem>>, vector<8x1xf32>
    %cst_37 = arith.constant dense<0.000000e+00> : vector<8xf32>
    %113 = vector.multi_reduction <add>, %80, %cst_37 [1] : vector<8x256xf32> to vector<8xf32>
    %114 = vector.shape_cast %113 : vector<8xf32> to vector<8x1xf32>
    %cst_38 = arith.constant dense<0.000000e+00> : vector<8xf32>
    %115 = vector.multi_reduction <add>, %110, %cst_38 [1] : vector<8x256xf32> to vector<8xf32>
    %116 = vector.shape_cast %115 : vector<8xf32> to vector<8x1xf32>
    %117 = arith.addf %114, %116 : vector<8x1xf32>
    %cst_39 = arith.constant 0.001953125 : f32
    %118 = vector.broadcast %cst_39 : f32 to vector<8x1xf32>
    %119 = arith.mulf %117, %118 : vector<8x1xf32>
    %120 = vector.broadcast %119 : vector<8x1xf32> to vector<8x256xf32>
    %121 = arith.subf %80, %120 : vector<8x256xf32>
    %122 = arith.mulf %121, %121 : vector<8x256xf32>
    %cst_40 = arith.constant dense<0.000000e+00> : vector<8xf32>
    %123 = vector.multi_reduction <add>, %122, %cst_40 [1] : vector<8x256xf32> to vector<8xf32>
    %124 = vector.shape_cast %123 : vector<8xf32> to vector<8x1xf32>
    %125 = vector.broadcast %119 : vector<8x1xf32> to vector<8x256xf32>
    %126 = arith.subf %110, %125 : vector<8x256xf32>
    %127 = arith.mulf %126, %126 : vector<8x256xf32>
    %cst_41 = arith.constant dense<0.000000e+00> : vector<8xf32>
    %128 = vector.multi_reduction <add>, %127, %cst_41 [1] : vector<8x256xf32> to vector<8xf32>
    %129 = vector.shape_cast %128 : vector<8xf32> to vector<8x1xf32>
    %130 = arith.addf %124, %129 : vector<8x1xf32>
    %cst_42 = arith.constant 0.001953125 : f32
    %131 = vector.broadcast %cst_42 : f32 to vector<8x1xf32>
    %132 = arith.mulf %130, %131 : vector<8x1xf32>
    %cst_43 = arith.constant 9.99999974E-6 : f32
    %133 = vector.broadcast %cst_43 : f32 to vector<8x1xf32>
    %134 = arith.addf %132, %133 : vector<8x1xf32>
    %135 = math.rsqrt %134 : vector<8x1xf32>
    %136 = arith.mulf %111, %135 : vector<8x1xf32>
    %137 = arith.mulf %119, %136 : vector<8x1xf32>
    %138 = arith.subf %112, %137 : vector<8x1xf32>
    %139 = vector.broadcast %136 : vector<8x1xf32> to vector<8x256xf32>
    %140 = arith.mulf %80, %139 : vector<8x256xf32>
    %141 = vector.broadcast %138 : vector<8x1xf32> to vector<8x256xf32>
    %142 = arith.addf %140, %141 : vector<8x256xf32>
    %cst_44 = arith.constant 0.000000e+00 : f32
    %143 = vector.broadcast %cst_44 : f32 to vector<8x256xf32>
    %144 = arith.maximumf %142, %143 : vector<8x256xf32>
    %145 = vector.broadcast %136 : vector<8x1xf32> to vector<8x256xf32>
    %146 = arith.mulf %110, %145 : vector<8x256xf32>
    %147 = vector.broadcast %138 : vector<8x1xf32> to vector<8x256xf32>
    %148 = arith.addf %146, %147 : vector<8x256xf32>
    %cst_45 = arith.constant 0.000000e+00 : f32
    %149 = vector.broadcast %cst_45 : f32 to vector<8x256xf32>
    %150 = arith.maximumf %148, %149 : vector<8x256xf32>
    %c17_i32_46 = arith.constant 17 : i32
    %151 = tpu.dynamic_rotate %144 by %c17_i32_46 dim 1 : vector<8x256xf32>, i32 -> vector<8x256xf32>
    %152 = vector.broadcast %9 : vector<1x256xf32> to vector<8x256xf32>
    %153 = arith.mulf %151, %152 : vector<8x256xf32>
    %c16_i32_47 = arith.constant 16 : i32
    %154 = tpu.dynamic_rotate %144 by %c16_i32_47 dim 1 : vector<8x256xf32>, i32 -> vector<8x256xf32>
    %155 = vector.broadcast %13 : vector<1x256xf32> to vector<8x256xf32>
    %156 = arith.mulf %154, %155 : vector<8x256xf32>
    %c15_i32_48 = arith.constant 15 : i32
    %157 = tpu.dynamic_rotate %144 by %c15_i32_48 dim 1 : vector<8x256xf32>, i32 -> vector<8x256xf32>
    %158 = vector.broadcast %20 : vector<1x256xf32> to vector<8x256xf32>
    %159 = arith.mulf %157, %158 : vector<8x256xf32>
    %c1_i32_49 = arith.constant 1 : i32
    %160 = tpu.dynamic_rotate %144 by %c1_i32_49 dim 1 : vector<8x256xf32>, i32 -> vector<8x256xf32>
    %161 = vector.broadcast %24 : vector<1x256xf32> to vector<8x256xf32>
    %162 = arith.mulf %160, %161 : vector<8x256xf32>
    %c255_i32_50 = arith.constant 255 : i32
    %163 = tpu.dynamic_rotate %144 by %c255_i32_50 dim 1 : vector<8x256xf32>, i32 -> vector<8x256xf32>
    %164 = vector.broadcast %28 : vector<1x256xf32> to vector<8x256xf32>
    %165 = arith.mulf %163, %164 : vector<8x256xf32>
    %c241_i32_51 = arith.constant 241 : i32
    %166 = tpu.dynamic_rotate %144 by %c241_i32_51 dim 1 : vector<8x256xf32>, i32 -> vector<8x256xf32>
    %167 = vector.broadcast %35 : vector<1x256xf32> to vector<8x256xf32>
    %168 = arith.mulf %166, %167 : vector<8x256xf32>
    %c240_i32_52 = arith.constant 240 : i32
    %169 = tpu.dynamic_rotate %144 by %c240_i32_52 dim 1 : vector<8x256xf32>, i32 -> vector<8x256xf32>
    %170 = vector.broadcast %39 : vector<1x256xf32> to vector<8x256xf32>
    %171 = arith.mulf %169, %170 : vector<8x256xf32>
    %c239_i32_53 = arith.constant 239 : i32
    %172 = tpu.dynamic_rotate %144 by %c239_i32_53 dim 1 : vector<8x256xf32>, i32 -> vector<8x256xf32>
    %173 = vector.broadcast %46 : vector<1x256xf32> to vector<8x256xf32>
    %174 = arith.mulf %172, %173 : vector<8x256xf32>
    %175 = tpu.concatenate %153, %156, %159, %162, %144, %165, %168, %171, %174 in 0 : vector<8x256xf32>, vector<8x256xf32>, vector<8x256xf32>, vector<8x256xf32>, vector<8x256xf32>, vector<8x256xf32>, vector<8x256xf32>, vector<8x256xf32>, vector<8x256xf32> -> vector<72x256xf32>
    %cst_54 = arith.constant dense<0.000000e+00> : vector<8x256xf32>
    %176 = tpu.matmul %49, %175, %cst_54 {dimension_numbers = #tpu.dot_dimension_numbers<[1], [0], [0], [1], [0, 0, 1, 1], [], []>} : vector<8x72xf32>, vector<72x256xf32>, vector<8x256xf32> -> vector<8x256xf32>
    %177 = vector.broadcast %50 : vector<8x1xf32> to vector<8x256xf32>
    %178 = arith.addf %176, %177 : vector<8x256xf32>
    %c17_i32_55 = arith.constant 17 : i32
    %179 = tpu.dynamic_rotate %150 by %c17_i32_55 dim 1 : vector<8x256xf32>, i32 -> vector<8x256xf32>
    %180 = vector.broadcast %9 : vector<1x256xf32> to vector<8x256xf32>
    %181 = arith.mulf %179, %180 : vector<8x256xf32>
    %c16_i32_56 = arith.constant 16 : i32
    %182 = tpu.dynamic_rotate %150 by %c16_i32_56 dim 1 : vector<8x256xf32>, i32 -> vector<8x256xf32>
    %183 = vector.broadcast %13 : vector<1x256xf32> to vector<8x256xf32>
    %184 = arith.mulf %182, %183 : vector<8x256xf32>
    %c15_i32_57 = arith.constant 15 : i32
    %185 = tpu.dynamic_rotate %150 by %c15_i32_57 dim 1 : vector<8x256xf32>, i32 -> vector<8x256xf32>
    %186 = vector.broadcast %20 : vector<1x256xf32> to vector<8x256xf32>
    %187 = arith.mulf %185, %186 : vector<8x256xf32>
    %c1_i32_58 = arith.constant 1 : i32
    %188 = tpu.dynamic_rotate %150 by %c1_i32_58 dim 1 : vector<8x256xf32>, i32 -> vector<8x256xf32>
    %189 = vector.broadcast %24 : vector<1x256xf32> to vector<8x256xf32>
    %190 = arith.mulf %188, %189 : vector<8x256xf32>
    %c255_i32_59 = arith.constant 255 : i32
    %191 = tpu.dynamic_rotate %150 by %c255_i32_59 dim 1 : vector<8x256xf32>, i32 -> vector<8x256xf32>
    %192 = vector.broadcast %28 : vector<1x256xf32> to vector<8x256xf32>
    %193 = arith.mulf %191, %192 : vector<8x256xf32>
    %c241_i32_60 = arith.constant 241 : i32
    %194 = tpu.dynamic_rotate %150 by %c241_i32_60 dim 1 : vector<8x256xf32>, i32 -> vector<8x256xf32>
    %195 = vector.broadcast %35 : vector<1x256xf32> to vector<8x256xf32>
    %196 = arith.mulf %194, %195 : vector<8x256xf32>
    %c240_i32_61 = arith.constant 240 : i32
    %197 = tpu.dynamic_rotate %150 by %c240_i32_61 dim 1 : vector<8x256xf32>, i32 -> vector<8x256xf32>
    %198 = vector.broadcast %39 : vector<1x256xf32> to vector<8x256xf32>
    %199 = arith.mulf %197, %198 : vector<8x256xf32>
    %c239_i32_62 = arith.constant 239 : i32
    %200 = tpu.dynamic_rotate %150 by %c239_i32_62 dim 1 : vector<8x256xf32>, i32 -> vector<8x256xf32>
    %201 = vector.broadcast %46 : vector<1x256xf32> to vector<8x256xf32>
    %202 = arith.mulf %200, %201 : vector<8x256xf32>
    %203 = tpu.concatenate %181, %184, %187, %190, %150, %193, %196, %199, %202 in 0 : vector<8x256xf32>, vector<8x256xf32>, vector<8x256xf32>, vector<8x256xf32>, vector<8x256xf32>, vector<8x256xf32>, vector<8x256xf32>, vector<8x256xf32>, vector<8x256xf32> -> vector<72x256xf32>
    %cst_63 = arith.constant dense<0.000000e+00> : vector<8x256xf32>
    %204 = tpu.matmul %49, %203, %cst_63 {dimension_numbers = #tpu.dot_dimension_numbers<[1], [0], [0], [1], [0, 0, 1, 1], [], []>} : vector<8x72xf32>, vector<72x256xf32>, vector<8x256xf32> -> vector<8x256xf32>
    %205 = vector.broadcast %50 : vector<8x1xf32> to vector<8x256xf32>
    %206 = arith.addf %204, %205 : vector<8x256xf32>
    %c0_64 = arith.constant 0 : index
    %c0_65 = arith.constant 0 : index
    %207 = vector.load %arg7[%c0_64, %c0_65] : memref<8x1xf32, #tpu.memory_space<vmem>>, vector<8x1xf32>
    %c0_66 = arith.constant 0 : index
    %c0_67 = arith.constant 0 : index
    %208 = vector.load %arg8[%c0_66, %c0_67] : memref<8x1xf32, #tpu.memory_space<vmem>>, vector<8x1xf32>
    %cst_68 = arith.constant dense<0.000000e+00> : vector<8xf32>
    %209 = vector.multi_reduction <add>, %178, %cst_68 [1] : vector<8x256xf32> to vector<8xf32>
    %210 = vector.shape_cast %209 : vector<8xf32> to vector<8x1xf32>
    %cst_69 = arith.constant dense<0.000000e+00> : vector<8xf32>
    %211 = vector.multi_reduction <add>, %206, %cst_69 [1] : vector<8x256xf32> to vector<8xf32>
    %212 = vector.shape_cast %211 : vector<8xf32> to vector<8x1xf32>
    %213 = arith.addf %210, %212 : vector<8x1xf32>
    %cst_70 = arith.constant 0.001953125 : f32
    %214 = vector.broadcast %cst_70 : f32 to vector<8x1xf32>
    %215 = arith.mulf %213, %214 : vector<8x1xf32>
    %216 = vector.broadcast %215 : vector<8x1xf32> to vector<8x256xf32>
    %217 = arith.subf %178, %216 : vector<8x256xf32>
    %218 = arith.mulf %217, %217 : vector<8x256xf32>
    %cst_71 = arith.constant dense<0.000000e+00> : vector<8xf32>
    %219 = vector.multi_reduction <add>, %218, %cst_71 [1] : vector<8x256xf32> to vector<8xf32>
    %220 = vector.shape_cast %219 : vector<8xf32> to vector<8x1xf32>
    %221 = vector.broadcast %215 : vector<8x1xf32> to vector<8x256xf32>
    %222 = arith.subf %206, %221 : vector<8x256xf32>
    %223 = arith.mulf %222, %222 : vector<8x256xf32>
    %cst_72 = arith.constant dense<0.000000e+00> : vector<8xf32>
    %224 = vector.multi_reduction <add>, %223, %cst_72 [1] : vector<8x256xf32> to vector<8xf32>
    %225 = vector.shape_cast %224 : vector<8xf32> to vector<8x1xf32>
    %226 = arith.addf %220, %225 : vector<8x1xf32>
    %cst_73 = arith.constant 0.001953125 : f32
    %227 = vector.broadcast %cst_73 : f32 to vector<8x1xf32>
    %228 = arith.mulf %226, %227 : vector<8x1xf32>
    %cst_74 = arith.constant 9.99999974E-6 : f32
    %229 = vector.broadcast %cst_74 : f32 to vector<8x1xf32>
    %230 = arith.addf %228, %229 : vector<8x1xf32>
    %231 = math.rsqrt %230 : vector<8x1xf32>
    %232 = arith.mulf %207, %231 : vector<8x1xf32>
    %233 = arith.mulf %215, %232 : vector<8x1xf32>
    %234 = arith.subf %208, %233 : vector<8x1xf32>
    %235 = vector.broadcast %232 : vector<8x1xf32> to vector<8x256xf32>
    %236 = arith.mulf %178, %235 : vector<8x256xf32>
    %237 = vector.broadcast %234 : vector<8x1xf32> to vector<8x256xf32>
    %238 = arith.addf %236, %237 : vector<8x256xf32>
    %cst_75 = arith.constant 0.000000e+00 : f32
    %239 = vector.broadcast %cst_75 : f32 to vector<8x256xf32>
    %240 = arith.maximumf %238, %239 : vector<8x256xf32>
    %241 = vector.broadcast %232 : vector<8x1xf32> to vector<8x256xf32>
    %242 = arith.mulf %206, %241 : vector<8x256xf32>
    %243 = vector.broadcast %234 : vector<8x1xf32> to vector<8x256xf32>
    %244 = arith.addf %242, %243 : vector<8x256xf32>
    %cst_76 = arith.constant 0.000000e+00 : f32
    %245 = vector.broadcast %cst_76 : f32 to vector<8x256xf32>
    %246 = arith.maximumf %244, %245 : vector<8x256xf32>
    %c0_77 = arith.constant 0 : index
    %c0_78 = arith.constant 0 : index
    %c0_79 = arith.constant 0 : index
    %247 = vector.load %arg9[%c0_77, %c0_78, %c0_79] : memref<2x8x256xf32, #tpu.memory_space<vmem>>, vector<1x8x256xf32>
    %248 = vector.shape_cast %247 : vector<1x8x256xf32> to vector<8x256xf32>
    %249 = vector.shape_cast %240 : vector<8x256xf32> to vector<1x8x256xf32>
    tpu.vector_store %arg9[%c0_77, %c0_78, %c0_79], %249 {strides = array<i32>} : memref<2x8x256xf32, #tpu.memory_space<vmem>>, vector<1x8x256xf32>,
    %c1_80 = arith.constant 1 : index
    %c0_81 = arith.constant 0 : index
    %c0_82 = arith.constant 0 : index
    %250 = vector.load %arg9[%c1_80, %c0_81, %c0_82] : memref<2x8x256xf32, #tpu.memory_space<vmem>>, vector<1x8x256xf32>
    %251 = vector.shape_cast %250 : vector<1x8x256xf32> to vector<8x256xf32>
    %252 = vector.shape_cast %246 : vector<8x256xf32> to vector<1x8x256xf32>
    tpu.vector_store %arg9[%c1_80, %c0_81, %c0_82], %252 {strides = array<i32>} : memref<2x8x256xf32, #tpu.memory_space<vmem>>, vector<1x8x256xf32>,
    return
  }
}

</mosaic_0001>

<bundles_post_ra>
// kernel: double_conv_block_forward.1
= control target key start
LH: loop header
LB: loop body
LE: loop exit
PB: predicated region body
PF: predicated region fallthrough
CT: control target
= control target key end

     0   :  { %v876_v2 = vmov 0.0   ;;  %s877_s13 = smov 17   ;;  %s878_s18 = smov 16   ;;  %v884_v5 = vmov 0   ;;  %v32_v7 = vlaneseq  ;;  %s1419_s0 = inlined_call_operand.vmem [shape: f32[2,8,256], index: 0, kind: input, shape index: {}]   ;;  %s1420_s2 = inlined_call_operand.vmem [shape: f32[8,1], index: 2, kind: input, shape index: {}]   ;;  %s1421_s1 = inlined_call_operand.vmem [shape: f32[8,72], index: 1, kind: input, shape index: {}]   ;;  %s1422_s3 = inlined_call_operand.vmem [shape: f32[8,1], index: 3, kind: input, shape index: {}]   ;;  %s1423_s4 = inlined_call_operand.vmem [shape: f32[8,1], index: 4, kind: input, shape index: {}]   ;;  %s1424_s6 = inlined_call_operand.vmem [shape: f32[8,1], index: 6, kind: input, shape index: {}]   ;;  %s1425_s5 = inlined_call_operand.vmem [shape: f32[8,72], index: 5, kind: input, shape index: {}]   ;;  %s1426_s7 = inlined_call_operand.vmem [shape: f32[8,1], index: 7, kind: input, shape index: {}]   ;;  %s1427_s8 = inlined_call_operand.vmem [shape: f32[8,1], index: 8, kind: input, shape index: {}]   ;;  %s1428_s9 = inlined_call_operand.vmem [shape: f32[2,8,256], index: 9, kind: output, shape index: {}]  }
   0x1   :  { %v939_v0 = vld [vmem:[%s1419_s0 + $0x10] sm:$0xff]  ;;  %v944_v1 = vld [vmem:[%s1419_s0] sm:$0xff]  ;;  %236 = vmatprep.mubr.f32.mxu0 %v876_v2  ;;  %374 = vmatprep.mubr.f32.mxu1 %v876_v2  ;;  %v955_v3 = vld [vmem:[%s1419_s0 + $0x18] sm:$0xff]  ;;  %s880_s19 = smov 1   ;;  %s881_s20 = smov 127  }
   0x2   :  { %246 = vrot.lane.b32.xlu1 %v939_v0, %s877_s13  ;;  %91 = vrot.lane.b32.xlu0 %v944_v1, %s877_s13  ;;  %v960_v4 = vld [vmem:[%s1419_s0 + $0x8] sm:$0xff]  ;;  %s879_s0 = smov 15   ;;  %s882_s21 = smov 113   ;;  %v86_v6 = vld [vmem:[%s1420_s2] sm:$0xff]  ;;  %v1025_v8 = vand.u32 127, %v32_v7 }
   0x3   :  { %s883_s22 = smov 112   ;;  %870 = vset.pattern.permute.xlu0 %v884_v5  ;;  %871 = vset.pattern.permute.xlu1 %v884_v5  ;;  %s885_s23 = smov 111  }
   0x4   :  { %v1028_v9 = vadd.s32 128, %v1025_v8  ;;  %v35_v10 = vand.u32 15, %v1025_v8  ;;  %vm37_vm0 = vcmp.ge.s32.totalorder %v1025_v8, 16  ;;  %vm95_vm2 = vcmp.lt.s32.totalorder %v1025_v8, 17 }
   0x5   :  { %vm104_vm5 = vcmp.lt.s32.totalorder %v1025_v8, 16  ;;  %v1062_v22 = vsel %vm37_vm0, 1.0, %v876_v2  ;;  %vm113_vm9 = vcmp.lt.s32.totalorder %v1025_v8, 15  ;;  %vm122_vm10 = vcmp.lt.s32.totalorder %v1025_v8, 1 }
   0x6   :  { %248 = vrot.lane.b32.xlu1 %v955_v3, %s877_s13  ;;  %93 = vrot.lane.b32.xlu0 %v960_v4, %s877_s13  ;;  %v36_v11 = vand.u32 15, %v1028_v9  ;;  %vm1033_vm1 = vcmp.ge.s32.totalorder %v35_v10, 1  ;;  %vm1080_vm6 = vcmp.le.s32.totalorder %v35_v10, 14  ;;  %vm131_vm11 = vcmp.lt.s32.totalorder %v1025_v8, 127 }
   0x7   :  { %vm41_vm4 = vmand %vm37_vm0, %vm1033_vm1  ;;  %v1098_v47 = vsel %vm1033_vm1, 1.0, %v876_v2  ;;  %vm68_vm12 = vcmp.lt.s32.totalorder %v1028_v9, 240  ;;  %vm140_vm14 = vcmp.lt.s32.totalorder %v1025_v8, 113  ;;  %vm149_vm15 = vcmp.lt.s32.totalorder %v1025_v8, 112 }
   0x8   :  { %vm1038_vm3 = vcmp.ge.s32.totalorder %v36_v11, 1  ;;  %v1055_v20 = vsel %vm41_vm4, 1.0, %v876_v2  ;;  %vm1086_vm7 = vcmp.le.s32.totalorder %v36_v11, 14  ;;  %vm53_vm8 = vmand %vm37_vm0, %vm1080_vm6  ;;  %v1170_v15 = vsel %vm68_vm12, 1.0, %v876_v2 }
   0x9   :  { %v1051_v19 = vsel %vm1038_vm3, 1.0, %v876_v2  ;;  %v1102_v48 = vsel %vm53_vm8, 1.0, %v876_v2  ;;  %v1107_v49 = vsel %vm1086_vm7, 1.0, %v876_v2  ;;  %vm70_vm13 = vmand %vm68_vm12, %vm1038_vm3  ;;  %vm158_vm1 = vcmp.lt.s32.totalorder %v1025_v8, 111 }
   0xa   :  { %102 = vrot.lane.b32.xlu1 %v960_v4, %s878_s18  ;;  %100 = vrot.lane.b32.xlu0 %v944_v1, %s878_s18  ;;  %vm80_vm0 = vmand %vm68_vm12, %vm1086_vm7  ;;  %vm168_vm3 = vcmask 588800  }
   0xe   :  { %256 = vrot.lane.b32.xlu1 %v955_v3, %s878_s18  ;;  %254 = vrot.lane.b32.xlu0 %v939_v0, %s878_s18 }
  0x12   :  { %111 = vrot.lane.b32.xlu1 %v960_v4, %s879_s0  ;;  %109 = vrot.lane.b32.xlu0 %v944_v1, %s879_s0 }
  0x16   :  { %120 = vrot.lane.b32.xlu1 %v960_v4, %s880_s19  ;;  %118 = vrot.lane.b32.xlu0 %v944_v1, %s880_s19 }
  0x1a   :  { %264 = vrot.lane.b32.xlu1 %v955_v3, %s879_s0  ;;  %262 = vrot.lane.b32.xlu0 %v939_v0, %s879_s0 }
  0x1e   :  { %272 = vrot.lane.b32.xlu1 %v955_v3, %s880_s19  ;;  %270 = vrot.lane.b32.xlu0 %v939_v0, %s880_s19 }
  0x22   :  { %129 = vrot.lane.b32.xlu1 %v960_v4, %s881_s20  ;;  %127 = vrot.lane.b32.xlu0 %v944_v1, %s881_s20 }
  0x26   :  { %280 = vrot.lane.b32.xlu1 %v955_v3, %s881_s20  ;;  %278 = vrot.lane.b32.xlu0 %v939_v0, %s881_s20 }
  0x2a   :  { %138 = vrot.lane.b32.xlu1 %v960_v4, %s882_s21  ;;  %136 = vrot.lane.b32.xlu0 %v944_v1, %s882_s21 }
  0x2e   :  { %147 = vrot.lane.b32.xlu1 %v960_v4, %s883_s22  ;;  %145 = vrot.lane.b32.xlu0 %v944_v1, %s883_s22 }
  0x32   :  { %288 = vrot.lane.b32.xlu1 %v955_v3, %s882_s21  ;;  %286 = vrot.lane.b32.xlu0 %v939_v0, %s882_s21 }
  0x36   :  { %296 = vrot.lane.b32.xlu1 %v955_v3, %s883_s22  ;;  %294 = vrot.lane.b32.xlu0 %v939_v0, %s883_s22 }
  0x3a   :  { %156 = vrot.lane.b32.xlu1 %v960_v4, %s885_s23  ;;  %154 = vrot.lane.b32.xlu0 %v944_v1, %s885_s23 }
  0x3e   :  { %304 = vrot.lane.b32.xlu1 %v955_v3, %s885_s23  ;;  %302 = vrot.lane.b32.xlu0 %v939_v0, %s885_s23 }
  0x42   :  { %165 = vperm.xlu0 %870, %v86_v6  }
  0x74   :  { %v247_v12 = vpop.permute.xlu1 %246  ;;  %v92_v13 = vpop.permute.xlu0 %91 }
  0x78   :  { %v249_v16 = vpop.permute.xlu1 %248  ;;  %v94_v17 = vpop.permute.xlu0 %93 }
  0x79   :  { %v96_v18 = vsel %vm95_vm2, %v92_v13, %v94_v17  ;;  %v97_v21 = vsel %vm95_vm2, %v94_v17, %v92_v13  ;;  %v250_v26 = vsel %vm95_vm2, %v247_v12, %v249_v16  ;;  %v251_v32 = vsel %vm95_vm2, %v249_v16, %v247_v12 }
  0x7a   :  { %v99_v25 = vmul.f32 %v1051_v19, %v96_v18  ;;  %v98_v29 = vmul.f32 %v1055_v20, %v97_v21  ;;  %v253_v36 = vmul.f32 %v1051_v19, %v250_v26  ;;  %v252_v40 = vmul.f32 %v1055_v20, %v251_v32 }
  0x7b   :  { %v1137_v18 = vsel %vm1080_vm6, 1.0, %v876_v2 }
  0x7c   :  { %v103_v23 = vpop.permute.xlu1 %102  ;;  %v101_v24 = vpop.permute.xlu0 %100 }
  0x7d   :  { %v106_v27 = vsel %vm104_vm5, %v103_v23, %v101_v24  ;;  %v105_v28 = vsel %vm104_vm5, %v101_v24, %v103_v23 }
  0x7e   :  { %v107_v30 = vmul.f32 %v1062_v22, %v106_v27  ;;  %v796_v31 = vpack.c.bf16 %v105_v28, %v99_v25 }
  0x80   :  { %v257_v33 = vpop.permute.xlu1 %256  ;;  %797 = vmatprep.subr.bf16.mxu0 %v796_v31  ;;  %v255_v34 = vpop.permute.xlu0 %254  ;;  %v798_v35 = vpack.c.bf16 %v107_v30, %v98_v29 }
  0x81   :  { %v259_v37 = vsel %vm104_vm5, %v257_v33, %v255_v34  ;;  %v258_v38 = vsel %vm104_vm5, %v255_v34, %v257_v33 }
  0x82   :  { %v260_v41 = vmul.f32 %v1062_v22, %v259_v37  ;;  %799 = vmatpush1.bf16.msra.mxu0 %v798_v35  ;;  %v812_v42 = vpack.c.bf16 %v258_v38, %v253_v36 }
  0x84   :  { %v112_v43 = vpop.permute.xlu1 %111  ;;  %813 = vmatprep.subr.bf16.mxu1 %v812_v42  ;;  %v110_v45 = vpop.permute.xlu0 %109  ;;  %v814_v46 = vpack.c.bf16 %v260_v41, %v252_v40  ;;  %v1163_v40 = vsel %vm70_vm13, 1.0, %v876_v2 }
  0x85   :  { %v114_v50 = vsel %vm113_vm9, %v110_v45, %v112_v43  ;;  %v115_v51 = vsel %vm113_vm9, %v112_v43, %v110_v45 }
  0x86   :  { %815 = vmatpush1.bf16.msra.mxu1 %v814_v46  ;;  %v116_v56 = vmul.f32 %v1102_v48, %v115_v51  ;;  %v117_v57 = vmul.f32 %v1107_v49, %v114_v50 }
  0x88   :  { %v121_v52 = vpop.permute.xlu1 %120  ;;  %v119_v53 = vpop.permute.xlu0 %118 }
  0x89   :  { %v123_v54 = vsel %vm122_vm10, %v119_v53, %v121_v52  ;;  %v124_v55 = vsel %vm122_vm10, %v121_v52, %v119_v53 }
  0x8a   :  { %v125_v58 = vmul.f32 %v1098_v47, %v124_v55  ;;  %v126_v59 = vmul.f32 %v1051_v19, %v123_v54 }
  0x8c   :  { %v265_v60 = vpop.permute.xlu1 %264  ;;  %v263_v61 = vpop.permute.xlu0 %262  ;;  %v800_v62 = vpack.c.bf16 %v126_v59, %v117_v57  ;;  %v802_v63 = vpack.c.bf16 %v125_v58, %v116_v56 }
  0x8d   :  { %v266_v5 = vsel %vm113_vm9, %v263_v61, %v265_v60  ;;  %v267_v6 = vsel %vm113_vm9, %v265_v60, %v263_v61 }
  0x8e   :  { %801 = vmatprep.subr.bf16.mxu0 %v800_v62  ;;  %v268_v13 = vmul.f32 %v1102_v48, %v267_v6  ;;  %v269_v14 = vmul.f32 %v1107_v49, %v266_v5  ;;  %v1198_v6 = vsel %vm80_vm0, 1.0, %v876_v2 }
  0x8f   :  { %803 = vmatpush1.bf16.msra.mxu0 %v802_v63 }
  0x90   :  { %v273_v7 = vpop.permute.xlu1 %272  ;;  %v271_v10 = vpop.permute.xlu0 %270 }
  0x91   :  { %v274_v11 = vsel %vm122_vm10, %v271_v10, %v273_v7  ;;  %v275_v12 = vsel %vm122_vm10, %v273_v7, %v271_v10 }
  0x92   :  { %v276_v16 = vmul.f32 %v1098_v47, %v275_v12  ;;  %v277_v17 = vmul.f32 %v1051_v19, %v274_v11 }
  0x94   :  { %v130_v21 = vpop.permute.xlu1 %129  ;;  %v128_v23 = vpop.permute.xlu0 %127  ;;  %v816_v24 = vpack.c.bf16 %v277_v17, %v269_v14  ;;  %v818_v25 = vpack.c.bf16 %v276_v16, %v268_v13  ;;  %v85_v16 = vld [vmem:[%s1421_s1] sm:$0xff] }
  0x95   :  { %v132_v26 = vsel %vm131_vm11, %v128_v23, %v130_v21  ;;  %v133_v27 = vsel %vm131_vm11, %v130_v21, %v128_v23 }
  0x96   :  { %v134_v28 = vmul.f32 %v1137_v18, %v132_v26  ;;  %v135_v29 = vmul.f32 %v1107_v49, %v133_v27  ;;  %817 = vmatprep.subr.bf16.mxu1 %v816_v24 }
  0x97   :  { %819 = vmatpush1.bf16.msra.mxu1 %v818_v25 }
  0x98   :  { %v281_v30 = vpop.permute.xlu1 %280  ;;  %v279_v31 = vpop.permute.xlu0 %278  ;;  %v804_v32 = vpack.c.bf16 %v135_v29, %v960_v4  ;;  %v806_v33 = vpack.c.bf16 %v134_v28, %v944_v1 }
  0x99   :  { %v282_v34 = vsel %vm131_vm11, %v279_v31, %v281_v30  ;;  %v283_v35 = vsel %vm131_vm11, %v281_v30, %v279_v31 }
  0x9a   :  { %v284_v36 = vmul.f32 %v1137_v18, %v282_v34  ;;  %v285_v37 = vmul.f32 %v1107_v49, %v283_v35  ;;  %805 = vmatprep.subr.bf16.mxu0 %v804_v32 }
  0x9b   :  { %807 = vmatpush1.bf16.msra.mxu0 %v806_v33 }
  0x9c   :  { %v139_v38 = vpop.permute.xlu1 %138  ;;  %v137_v1 = vpop.permute.xlu0 %136  ;;  %v820_v4 = vpack.c.bf16 %v285_v37, %v955_v3  ;;  %v822_v39 = vpack.c.bf16 %v284_v36, %v939_v0 }
  0x9d   :  { %v142_v41 = vsel %vm140_vm14, %v139_v38, %v137_v1  ;;  %v141_v3 = vsel %vm140_vm14, %v137_v1, %v139_v38 }
  0x9e   :  { %821 = vmatprep.subr.bf16.mxu1 %v820_v4  ;;  %v144_v45 = vmul.f32 %v1163_v40, %v142_v41  ;;  %v143_v51 = vmul.f32 %v1098_v47, %v141_v3 }
  0x9f   :  { %823 = vmatpush1.bf16.msra.mxu1 %v822_v39 }
  0xa0   :  { %v148_v42 = vpop.permute.xlu1 %147  ;;  %v146_v0 = vpop.permute.xlu0 %145 }
  0xa1   :  { %v151_v43 = vsel %vm149_vm15, %v148_v42, %v146_v0  ;;  %v150_v46 = vsel %vm149_vm15, %v146_v0, %v148_v42 }
  0xa2   :  { %v153_v50 = vmul.f32 %v1170_v15, %v151_v43  ;;  %v810_v55 = vpack.c.bf16 %v150_v46, %v143_v51 }
  0xa4   :  { %v289_v52 = vpop.permute.xlu1 %288  ;;  %v287_v53 = vpop.permute.xlu0 %286  ;;  %v808_v54 = vpack.c.bf16 %v153_v50, %v144_v45 }
  0xa5   :  { %v291_v56 = vsel %vm140_vm14, %v289_v52, %v287_v53  ;;  %v290_v57 = vsel %vm140_vm14, %v287_v53, %v289_v52 }
  0xa6   :  { %809 = vmatprep.subr.bf16.mxu0 %v808_v54  ;;  %v293_v61 = vmul.f32 %v1163_v40, %v291_v56  ;;  %v292_v5 = vmul.f32 %v1098_v47, %v290_v57  ;;  %v381_v57 = vld [vmem:[%s1422_s3] sm:$0xff] }
  0xa7   :  { %811 = vmatpush1.bf16.msra.mxu0 %v810_v55 }
  0xa8   :  { %v297_v58 = vpop.permute.xlu1 %296  ;;  %v295_v59 = vpop.permute.xlu0 %294 }
  0xa9   :  { %v299_v60 = vsel %vm149_vm15, %v297_v58, %v295_v59  ;;  %v298_v62 = vsel %vm149_vm15, %v295_v59, %v297_v58 }
  0xaa   :  { %v301_v63 = vmul.f32 %v1170_v15, %v299_v60  ;;  %v826_v10 = vpack.c.bf16 %v298_v62, %v292_v5  ;;  %v382_v60 = vld [vmem:[%s1423_s4] sm:$0xff] }
  0xac   :  { %v157_v44 = vpop.permute.xlu1 %156  ;;  %v155_v9 = vpop.permute.xlu0 %154  ;;  %v824_v7 = vpack.c.bf16 %v301_v63, %v293_v61 }
  0xad   :  { %v159_v11 = vsel %vm158_vm1, %v155_v9, %v157_v44  ;;  %v160_v12 = vsel %vm158_vm1, %v157_v44, %v155_v9 }
  0xae   :  { %v161_v13 = vmul.f32 %v1137_v18, %v159_v11  ;;  %v162_v14 = vmul.f32 %v1198_v6, %v160_v12  ;;  %825 = vmatprep.subr.bf16.mxu1 %v824_v7 }
  0xaf   :  { %827 = vmatpush1.bf16.msra.mxu1 %v826_v10 }
  0xb0   :  { %v305_v17 = vpop.permute.xlu1 %304  ;;  %188 = vmatprep.subr.mxu0 %v162_v14  ;;  %v303_v21 = vpop.permute.xlu0 %302 }
  0xb1   :  { %v306_v23 = vsel %vm158_vm1, %v303_v21, %v305_v17  ;;  %v307_v24 = vsel %vm158_vm1, %v305_v17, %v303_v21  ;;  %189 = vmatpush1.msra.mxu0 %v161_v13 }
  0xb2   :  { %v308_v25 = vmul.f32 %v1137_v18, %v306_v23  ;;  %v309_v26 = vmul.f32 %v1198_v6, %v307_v24  ;;  %788 = vmatmul.mubr.msk.f32.vlgmr.msra.gmra.mrb[0].mxu0 %vm168_vm3, %v85_v16  ;;  %v88_v24 = vld [vmem:[%s1424_s6] sm:$0xff] }
  0xb3   :  { %570 = vmatprep.mubr.f32.mxu0 %v876_v2 }
  0xb4   :  { %326 = vmatprep.subr.mxu1 %v309_v26 }
  0xb5   :  { %327 = vmatpush1.msra.mxu1 %v308_v25 }
  0xb6   :  { %791 = vmatmul.mubr.msk.f32.vlgmr.msra.gmra.mrb[0].mxu1 %vm168_vm3, %v85_v16 }
  0xb7   :  { %705 = vmatprep.mubr.f32.mxu1 %v876_v2 }
  0xc1   :  { %v166_v27 = vpop.permute.xlu0 %165 }
 0x185   :  { %v238_v28 = vpop.f32.mrb[0].mxu0 }
 0x186   :  { %v240_v29 = vpop.f32.mrb[1].mxu0  ;;  %v239_v30 = vadd.f32 %v238_v28, %v166_v27 }
 0x187   :  { %v241_v31 = vadd.f32 %v240_v29, %v166_v27 }
 0x189   :  { %v376_v32 = vpop.f32.mrb[0].mxu1  ;;  %v383_v33 = vadd.f32 %v241_v31, %v239_v30 }
 0x18a   :  { %v377_v34 = vadd.f32 %v376_v32, %v166_v27  ;;  %v378_v35 = vpop.f32.mrb[1].mxu1 }
 0x18b   :  { %v379_v36 = vadd.f32 %v378_v35, %v166_v27  ;;  %384 = vadd.xlane.f32.xlu1 %v383_v33 }
 0x18d   :  { %v386_v37 = vadd.f32 %v379_v36, %v377_v34 }
 0x18f   :  { %387 = vadd.xlane.f32.xlu0 %v386_v37 }
 0x218   :  { %v385_v38 = vpop.xlane.xlu1 %384 }
 0x21c   :  { %v388_v1 = vpop.xlane.xlu0 %387 }
 0x21d   :  { %v389_v4 = vadd.f32 %v388_v1, %v385_v38 }
 0x21f   :  { %v390_v39 = vmul.f32 0.001953125, %v389_v4 }
 0x221   :  { %v398_v41 = vsub.f32 %v377_v34, %v390_v39  ;;  %v399_v3 = vsub.f32 %v379_v36, %v390_v39  ;;  %v391_v2 = vsub.f32 %v239_v30, %v390_v39  ;;  %v392_v42 = vsub.f32 %v241_v31, %v390_v39 }
 0x223   :  { %v400_v0 = vmul.f32 %v398_v41, %v398_v41  ;;  %v401_v43 = vmul.f32 %v399_v3, %v399_v3  ;;  %v393_v45 = vmul.f32 %v391_v2, %v391_v2  ;;  %v394_v46 = vmul.f32 %v392_v42, %v392_v42 }
 0x225   :  { %v402_v50 = vadd.f32 %v401_v43, %v400_v0  ;;  %v395_v51 = vadd.f32 %v394_v46, %v393_v45 }
 0x227   :  { %403 = vadd.xlane.f32.xlu0 %v402_v50  ;;  %396 = vadd.xlane.f32.xlu1 %v395_v51 }
 0x2b4   :  { %v404_v52 = vpop.xlane.xlu0 %403  ;;  %v397_v53 = vpop.xlane.xlu1 %396 }
 0x2b5   :  { %v405_v54 = vadd.f32 %v404_v52, %v397_v53 }
 0x2b7   :  { %v406_v55 = vmul.f32 0.001953125, %v405_v54 }
 0x2b9   :  { %v407_v56 = vadd.f32 1e-05, %v406_v55 }
 0x2bb   :  { %872 = vrsqrt.f32 %v407_v56 }
 0x2c5   :  { %v873_v58 = vpop.eup %872 }
 0x2c6   :  { %v409_v59 = vmul.f32 %v873_v58, %v381_v57 }
 0x2c8   :  { %414 = vperm.xlu1 %871, %v409_v59   ;;  %v410_v61 = vmul.f32 %v409_v59, %v390_v39 }
 0x2ca   :  { %v411_v62 = vsub.f32 %v382_v60, %v410_v61 }
 0x2cc   :  { %421 = vperm.xlu0 %870, %v411_v62  }
 0x347   :  { %v415_v63 = vpop.permute.xlu1 %414 }
 0x348   :  { %v417_v5 = vmul.f32 %v415_v63, %v239_v30  ;;  %v428_v44 = vmul.f32 %v415_v63, %v377_v34  ;;  %v418_v7 = vmul.f32 %v415_v63, %v241_v31  ;;  %v429_v16 = vmul.f32 %v415_v63, %v379_v36 }
 0x34b   :  { %v422_v9 = vpop.permute.xlu0 %421 }
 0x34c   :  { %v424_v10 = vadd.f32 %v422_v9, %v417_v5  ;;  %v430_v11 = vadd.f32 %v428_v44, %v422_v9  ;;  %v425_v12 = vadd.f32 %v422_v9, %v418_v7  ;;  %v431_v21 = vadd.f32 %v429_v16, %v422_v9 }
 0x34e   :  { %v1225_v13 = vmax.f32 %v424_v10, 0.0  ;;  %v1227_v14 = vmax.f32 %v430_v11, 0.0  ;;  %v1233_v17 = vmax.f32 %v425_v12, 0.0  ;;  %v1239_v23 = vmax.f32 %v431_v21, 0.0 }
 0x350   :  { %434 = vrot.lane.b32.xlu1 %v1225_v13, %s877_s13  ;;  %577 = vrot.lane.b32.xlu0 %v1227_v14, %s877_s13 }
 0x354   :  { %436 = vrot.lane.b32.xlu1 %v1233_v17, %s877_s13  ;;  %442 = vrot.lane.b32.xlu0 %v1225_v13, %s878_s18 }
 0x358   :  { %579 = vrot.lane.b32.xlu1 %v1239_v23, %s877_s13  ;;  %585 = vrot.lane.b32.xlu0 %v1227_v14, %s878_s18 }
 0x35c   :  { %444 = vrot.lane.b32.xlu1 %v1233_v17, %s878_s18  ;;  %450 = vrot.lane.b32.xlu0 %v1225_v13, %s879_s0 }
 0x360   :  { %587 = vrot.lane.b32.xlu1 %v1239_v23, %s878_s18  ;;  %458 = vrot.lane.b32.xlu0 %v1225_v13, %s880_s19 }
 0x364   :  { %452 = vrot.lane.b32.xlu1 %v1233_v17, %s879_s0  ;;  %593 = vrot.lane.b32.xlu0 %v1227_v14, %s879_s0 }
 0x368   :  { %460 = vrot.lane.b32.xlu1 %v1233_v17, %s880_s19  ;;  %601 = vrot.lane.b32.xlu0 %v1227_v14, %s880_s19 }
 0x36c   :  { %595 = vrot.lane.b32.xlu1 %v1239_v23, %s879_s0  ;;  %466 = vrot.lane.b32.xlu0 %v1225_v13, %s881_s20 }
 0x370   :  { %603 = vrot.lane.b32.xlu1 %v1239_v23, %s880_s19  ;;  %609 = vrot.lane.b32.xlu0 %v1227_v14, %s881_s20 }
 0x374   :  { %468 = vrot.lane.b32.xlu1 %v1233_v17, %s881_s20  ;;  %474 = vrot.lane.b32.xlu0 %v1225_v13, %s882_s21 }
 0x378   :  { %611 = vrot.lane.b32.xlu1 %v1239_v23, %s881_s20  ;;  %482 = vrot.lane.b32.xlu0 %v1225_v13, %s883_s22 }
 0x37c   :  { %476 = vrot.lane.b32.xlu1 %v1233_v17, %s882_s21  ;;  %617 = vrot.lane.b32.xlu0 %v1227_v14, %s882_s21 }
 0x380   :  { %484 = vrot.lane.b32.xlu1 %v1233_v17, %s883_s22  ;;  %625 = vrot.lane.b32.xlu0 %v1227_v14, %s883_s22 }
 0x384   :  { %619 = vrot.lane.b32.xlu1 %v1239_v23, %s882_s21  ;;  %490 = vrot.lane.b32.xlu0 %v1225_v13, %s885_s23 }
 0x388   :  { %627 = vrot.lane.b32.xlu1 %v1239_v23, %s883_s22  ;;  %633 = vrot.lane.b32.xlu0 %v1227_v14, %s885_s23 }
 0x38c   :  { %492 = vrot.lane.b32.xlu1 %v1233_v17, %s885_s23  ;;  %500 = vperm.xlu0 %870, %v88_v24  }
 0x390   :  { %635 = vrot.lane.b32.xlu1 %v1239_v23, %s885_s23 }
 0x3c2   :  { %v435_v25 = vpop.permute.xlu1 %434  ;;  %v578_v26 = vpop.permute.xlu0 %577 }
 0x3c6   :  { %v437_v27 = vpop.permute.xlu1 %436  ;;  %v443_v28 = vpop.permute.xlu0 %442 }
 0x3c7   :  { %v438_v31 = vsel %vm95_vm2, %v435_v25, %v437_v27  ;;  %v439_v32 = vsel %vm95_vm2, %v437_v27, %v435_v25 }
 0x3c8   :  { %v441_v33 = vmul.f32 %v1051_v19, %v438_v31  ;;  %v440_v1 = vmul.f32 %v1055_v20, %v439_v32 }
 0x3ca   :  { %v580_v29 = vpop.permute.xlu1 %579  ;;  %v586_v30 = vpop.permute.xlu0 %585 }
 0x3cb   :  { %v581_v36 = vsel %vm95_vm2, %v578_v26, %v580_v29  ;;  %v582_v41 = vsel %vm95_vm2, %v580_v29, %v578_v26 }
 0x3cc   :  { %v584_v3 = vmul.f32 %v1051_v19, %v581_v36  ;;  %v583_v46 = vmul.f32 %v1055_v20, %v582_v41 }
 0x3ce   :  { %v445_v34 = vpop.permute.xlu1 %444  ;;  %v451_v35 = vpop.permute.xlu0 %450 }
 0x3cf   :  { %v446_v37 = vsel %vm104_vm5, %v443_v28, %v445_v34  ;;  %v447_v38 = vsel %vm104_vm5, %v445_v34, %v443_v28 }
 0x3d0   :  { %v448_v4 = vmul.f32 %v1062_v22, %v447_v38  ;;  %v828_v39 = vpack.c.bf16 %v446_v37, %v441_v33 }
 0x3d2   :  { %v830_v2 = vpack.c.bf16 %v448_v4, %v440_v1  ;;  %v588_v42 = vpop.permute.xlu1 %587  ;;  %829 = vmatprep.subr.bf16.mxu0 %v828_v39  ;;  %v459_v0 = vpop.permute.xlu0 %458 }
 0x3d3   :  { %v589_v43 = vsel %vm104_vm5, %v586_v30, %v588_v42  ;;  %v590_v45 = vsel %vm104_vm5, %v588_v42, %v586_v30 }
 0x3d4   :  { %v591_v50 = vmul.f32 %v1062_v22, %v590_v45  ;;  %v844_v51 = vpack.c.bf16 %v589_v43, %v584_v3  ;;  %831 = vmatpush1.bf16.msra.mxu0 %v830_v2 }
 0x3d6   :  { %v846_v52 = vpack.c.bf16 %v591_v50, %v583_v46  ;;  %v453_v53 = vpop.permute.xlu1 %452  ;;  %845 = vmatprep.subr.bf16.mxu1 %v844_v51  ;;  %v594_v54 = vpop.permute.xlu0 %593 }
 0x3d7   :  { %v454_v55 = vsel %vm113_vm9, %v451_v35, %v453_v53  ;;  %v455_v56 = vsel %vm113_vm9, %v453_v53, %v451_v35 }
 0x3d8   :  { %847 = vmatpush1.bf16.msra.mxu1 %v846_v52  ;;  %v456_v59 = vmul.f32 %v1102_v48, %v455_v56  ;;  %v457_v60 = vmul.f32 %v1107_v49, %v454_v55 }
 0x3da   :  { %v461_v57 = vpop.permute.xlu1 %460  ;;  %v602_v58 = vpop.permute.xlu0 %601 }
 0x3db   :  { %v462_v20 = vsel %vm122_vm10, %v459_v0, %v461_v57  ;;  %v463_v22 = vsel %vm122_vm10, %v461_v57, %v459_v0 }
 0x3dc   :  { %v464_v61 = vmul.f32 %v1098_v47, %v463_v22  ;;  %v465_v62 = vmul.f32 %v1051_v19, %v462_v20 }
 0x3de   :  { %v834_v63 = vpack.c.bf16 %v464_v61, %v456_v59  ;;  %v596_v5 = vpop.permute.xlu1 %595  ;;  %v467_v44 = vpop.permute.xlu0 %466  ;;  %v832_v9 = vpack.c.bf16 %v465_v62, %v457_v60 }
 0x3df   :  { %v597_v7 = vsel %vm113_vm9, %v594_v54, %v596_v5  ;;  %v598_v10 = vsel %vm113_vm9, %v596_v5, %v594_v54 }
 0x3e0   :  { %833 = vmatprep.subr.bf16.mxu0 %v832_v9  ;;  %v599_v24 = vmul.f32 %v1102_v48, %v598_v10  ;;  %v600_v25 = vmul.f32 %v1107_v49, %v597_v7 }
 0x3e1   :  { %835 = vmatpush1.bf16.msra.mxu0 %v834_v63 }
 0x3e2   :  { %v604_v11 = vpop.permute.xlu1 %603  ;;  %v610_v12 = vpop.permute.xlu0 %609 }
 0x3e3   :  { %v605_v16 = vsel %vm122_vm10, %v602_v58, %v604_v11  ;;  %v606_v21 = vsel %vm122_vm10, %v604_v11, %v602_v58 }
 0x3e4   :  { %v607_v26 = vmul.f32 %v1098_v47, %v606_v21  ;;  %v608_v27 = vmul.f32 %v1051_v19, %v605_v16 }
 0x3e6   :  { %v850_v28 = vpack.c.bf16 %v607_v26, %v599_v24  ;;  %v469_v29 = vpop.permute.xlu1 %468  ;;  %v475_v30 = vpop.permute.xlu0 %474  ;;  %v848_v31 = vpack.c.bf16 %v608_v27, %v600_v25 }
 0x3e7   :  { %v470_v32 = vsel %vm131_vm11, %v467_v44, %v469_v29  ;;  %v471_v33 = vsel %vm131_vm11, %v469_v29, %v467_v44 }
 0x3e8   :  { %v472_v34 = vmul.f32 %v1137_v18, %v470_v32  ;;  %v473_v48 = vmul.f32 %v1107_v49, %v471_v33  ;;  %849 = vmatprep.subr.bf16.mxu1 %v848_v31 }
 0x3e9   :  { %851 = vmatpush1.bf16.msra.mxu1 %v850_v28 }
 0x3ea   :  { %v838_v35 = vpack.c.bf16 %v472_v34, %v1225_v13  ;;  %v612_v36 = vpop.permute.xlu1 %611  ;;  %v483_v19 = vpop.permute.xlu0 %482  ;;  %v836_v37 = vpack.c.bf16 %v473_v48, %v1233_v17 }
 0x3eb   :  { %v613_v38 = vsel %vm131_vm11, %v610_v12, %v612_v36  ;;  %v614_v1 = vsel %vm131_vm11, %v612_v36, %v610_v12 }
 0x3ec   :  { %v615_v4 = vmul.f32 %v1137_v18, %v613_v38  ;;  %v616_v39 = vmul.f32 %v1107_v49, %v614_v1  ;;  %837 = vmatprep.subr.bf16.mxu0 %v836_v37 }
 0x3ed   :  { %839 = vmatpush1.bf16.msra.mxu0 %v838_v35 }
 0x3ee   :  { %v854_v41 = vpack.c.bf16 %v615_v4, %v1227_v14  ;;  %v477_v3 = vpop.permute.xlu1 %476  ;;  %v852_v13 = vpack.c.bf16 %v616_v39, %v1239_v23  ;;  %v618_v2 = vpop.permute.xlu0 %617 }
 0x3ef   :  { %v479_v17 = vsel %vm140_vm14, %v477_v3, %v475_v30  ;;  %v478_v42 = vsel %vm140_vm14, %v475_v30, %v477_v3 }
 0x3f0   :  { %853 = vmatprep.subr.bf16.mxu1 %v852_v13  ;;  %v481_v43 = vmul.f32 %v1163_v40, %v479_v17  ;;  %v480_v45 = vmul.f32 %v1098_v47, %v478_v42  ;;  %v712_v42 = vld [vmem:[%s1426_s7] sm:$0xff] }
 0x3f1   :  { %855 = vmatpush1.bf16.msra.mxu1 %v854_v41 }
 0x3f2   :  { %v485_v0 = vpop.permute.xlu1 %484  ;;  %v626_v46 = vpop.permute.xlu0 %625 }
 0x3f3   :  { %v487_v49 = vsel %vm149_vm15, %v485_v0, %v483_v19  ;;  %v486_v14 = vsel %vm149_vm15, %v483_v19, %v485_v0 }
 0x3f4   :  { %v489_v23 = vmul.f32 %v1170_v15, %v487_v49  ;;  %v842_v52 = vpack.c.bf16 %v486_v14, %v480_v45 }
 0x3f6   :  { %v620_v50 = vpop.permute.xlu1 %619  ;;  %v840_v51 = vpack.c.bf16 %v489_v23, %v481_v43  ;;  %v491_v58 = vpop.permute.xlu0 %490  ;;  %v713_v43 = vld [vmem:[%s1427_s8] sm:$0xff] }
 0x3f7   :  { %v622_v53 = vsel %vm140_vm14, %v620_v50, %v618_v2  ;;  %v621_v54 = vsel %vm140_vm14, %v618_v2, %v620_v50 }
 0x3f8   :  { %841 = vmatprep.subr.bf16.mxu0 %v840_v51  ;;  %v624_v57 = vmul.f32 %v1163_v40, %v622_v53  ;;  %v623_v59 = vmul.f32 %v1098_v47, %v621_v54 }
 0x3f9   :  { %843 = vmatpush1.bf16.msra.mxu0 %v842_v52 }
 0x3fa   :  { %v628_v55 = vpop.permute.xlu1 %627  ;;  %v634_v47 = vpop.permute.xlu0 %633 }
 0x3fb   :  { %v630_v56 = vsel %vm149_vm15, %v628_v55, %v626_v46  ;;  %v629_v20 = vsel %vm149_vm15, %v626_v46, %v628_v55 }
 0x3fc   :  { %v632_v22 = vmul.f32 %v1170_v15, %v630_v56  ;;  %v858_v62 = vpack.c.bf16 %v629_v20, %v623_v59  ;;  %v87_v15 = vld [vmem:[%s1425_s5] sm:$0xff] }
 0x3fe   :  { %v493_v60 = vpop.permute.xlu1 %492  ;;  %v856_v61 = vpack.c.bf16 %v632_v22, %v624_v57 }
 0x3ff   :  { %v494_v63 = vsel %vm158_vm1, %v491_v58, %v493_v60  ;;  %v495_v5 = vsel %vm158_vm1, %v493_v60, %v491_v58 }
 0x400   :  { %v496_v44 = vmul.f32 %v1137_v18, %v494_v63  ;;  %v497_v40 = vmul.f32 %v1198_v6, %v495_v5  ;;  %857 = vmatprep.subr.bf16.mxu1 %v856_v61 }
 0x401   :  { %859 = vmatpush1.bf16.msra.mxu1 %v858_v62 }
 0x402   :  { %v636_v9 = vpop.permute.xlu1 %635  ;;  %522 = vmatprep.subr.mxu0 %v497_v40 }
 0x403   :  { %v637_v7 = vsel %vm158_vm1, %v634_v47, %v636_v9  ;;  %v638_v10 = vsel %vm158_vm1, %v636_v9, %v634_v47  ;;  %523 = vmatpush1.msra.mxu0 %v496_v44 }
 0x404   :  { %v639_v11 = vmul.f32 %v1137_v18, %v637_v7  ;;  %v640_v12 = vmul.f32 %v1198_v6, %v638_v10  ;;  %792 = vmatmul.mubr.msk.f32.vlgmr.msra.gmra.mrb[2].mxu0 %vm168_vm3, %v87_v15 }
 0x406   :  { %657 = vmatprep.subr.mxu1 %v640_v12 }
 0x407   :  { %658 = vmatpush1.msra.mxu1 %v639_v11 }
 0x408   :  { %793 = vmatmul.mubr.msk.f32.vlgmr.msra.gmra.mrb[2].mxu1 %vm168_vm3, %v87_v15 }
 0x40b   :  { %v501_v16 = vpop.permute.xlu0 %500 }
 0x4d7   :  { %v572_v21 = vpop.f32.mrb[2].mxu0 }
 0x4d8   :  { %v573_v24 = vadd.f32 %v572_v21, %v501_v16  ;;  %v574_v25 = vpop.f32.mrb[3].mxu0 }
 0x4d9   :  { %v575_v26 = vadd.f32 %v574_v25, %v501_v16 }
 0x4db   :  { %v707_v27 = vpop.f32.mrb[2].mxu1  ;;  %v714_v28 = vadd.f32 %v575_v26, %v573_v24 }
 0x4dc   :  { %v708_v8 = vadd.f32 %v707_v27, %v501_v16  ;;  %v709_v29 = vpop.f32.mrb[3].mxu1 }
 0x4dd   :  { %v710_v30 = vadd.f32 %v709_v29, %v501_v16  ;;  %715 = vadd.xlane.f32.xlu1 %v714_v28 }
 0x4df   :  { %v717_v18 = vadd.f32 %v710_v30, %v708_v8 }
 0x4e1   :  { %718 = vadd.xlane.f32.xlu0 %v717_v18 }
 0x56a   :  { %v716_v6 = vpop.xlane.xlu1 %715 }
 0x56e   :  { %v719_v31 = vpop.xlane.xlu0 %718 }
 0x56f   :  { %v720_v32 = vadd.f32 %v719_v31, %v716_v6 }
 0x571   :  { %v721_v33 = vmul.f32 0.001953125, %v720_v32 }
 0x573   :  { %v729_v34 = vsub.f32 %v708_v8, %v721_v33  ;;  %v730_v48 = vsub.f32 %v710_v30, %v721_v33  ;;  %v722_v35 = vsub.f32 %v573_v24, %v721_v33  ;;  %v723_v36 = vsub.f32 %v575_v26, %v721_v33 }
 0x575   :  { %v731_v19 = vmul.f32 %v729_v34, %v729_v34  ;;  %v732_v37 = vmul.f32 %v730_v48, %v730_v48  ;;  %v724_v38 = vmul.f32 %v722_v35, %v722_v35  ;;  %v725_v1 = vmul.f32 %v723_v36, %v723_v36 }
 0x577   :  { %v733_v4 = vadd.f32 %v732_v37, %v731_v19  ;;  %v726_v39 = vadd.f32 %v725_v1, %v724_v38 }
 0x579   :  { %734 = vadd.xlane.f32.xlu1 %v733_v4  ;;  %727 = vadd.xlane.f32.xlu0 %v726_v39 }
 0x606   :  { %v735_v41 = vpop.xlane.xlu1 %734  ;;  %v728_v3 = vpop.xlane.xlu0 %727 }
 0x607   :  { %v736_v13 = vadd.f32 %v735_v41, %v728_v3 }
 0x609   :  { %v737_v2 = vmul.f32 0.001953125, %v736_v13 }
 0x60b   :  { %v738_v17 = vadd.f32 1e-05, %v737_v2 }
 0x60d   :  { %874 = vrsqrt.f32 %v738_v17 }
 0x617   :  { %v875_v0 = vpop.eup %874 }
 0x618   :  { %v740_v49 = vmul.f32 %v875_v0, %v712_v42 }
 0x61a   :  { %745 = vperm.xlu0 %870, %v740_v49   ;;  %v741_v14 = vmul.f32 %v740_v49, %v721_v33 }
 0x61c   :  { %v742_v23 = vsub.f32 %v713_v43, %v741_v14 }
 0x61e   :  { %752 = vperm.xlu1 %871, %v742_v23  }
 0x699   :  { %v746_v45 = vpop.permute.xlu0 %745 }
 0x69a   :  { %v748_v46 = vmul.f32 %v746_v45, %v573_v24  ;;  %v749_v50 = vmul.f32 %v746_v45, %v575_v26  ;;  %v759_v51 = vmul.f32 %v746_v45, %v708_v8  ;;  %v760_v52 = vmul.f32 %v746_v45, %v710_v30 }
 0x69d   :  { %v753_v53 = vpop.permute.xlu1 %752 }
 0x69e   :  { %v755_v54 = vadd.f32 %v753_v53, %v748_v46  ;;  %v756_v55 = vadd.f32 %v753_v53, %v749_v50  ;;  %v761_v56 = vadd.f32 %v759_v51, %v753_v53  ;;  %v762_v57 = vadd.f32 %v760_v52, %v753_v53 }
 0x6a0   :  { %v757_v58 = vmax.f32 %v755_v54, 0.0  ;;  %v758_v20 = vmax.f32 %v756_v55, 0.0  ;;  %v763_v22 = vmax.f32 %v761_v56, 0.0  ;;  %v764_v59 = vmax.f32 %v762_v57, 0.0 }
 0x6a2   :  { %765 = vst [vmem:[%s1428_s9] sm:$0xff] %v757_v58  ;;  %766 = vst [vmem:[%s1428_s9 + $0x8] sm:$0xff] %v758_v20 }
 0x6a3   :  { %794 = vst [vmem:[%s1428_s9 + $0x10] sm:$0xff] %v763_v22  ;;  %795 = vst [vmem:[%s1428_s9 + $0x18] sm:$0xff] %v764_v59 }

</bundles_post_ra>
